<compile_context>
chip_gen: v5e
topology: v5e:2x2
jax: 0.10.0
libtpu: 0.0.40
codegen_flags: <defaults>
</compile_context>

<pallas_src>
import functools

import numpy as np
import jax
import jax.numpy as jnp
from jax import lax
from jax.experimental import pallas as pl
from jax.experimental.pallas import tpu as pltpu


def _round_up(x, m):
    return ((x + m - 1) // m) * m


# ----------------------------------------------------------------------------- #
# Kernel 1: normalizer(x) = x / 255.0   (tiled, lane-dense)
# Not used inside forward() (folded into the conv weights) but kept since the
# reference module exposes it as a method.
# ----------------------------------------------------------------------------- #
def _normalize_kernel(x_ref, o_ref):
    o_ref[...] = x_ref[...] * (1.0 / 255.0)


def pallas_normalizer(x, *, lane=1024, max_tile_rows=512):
    """x: any-shape float32 array of pixel values; returns x / 255.0 elementwise."""
    orig_shape = x.shape
    flat = x.reshape(-1)
    n = flat.shape[0]

    rows = pl.cdiv(n, lane)
    tile_r = min(max_tile_rows, max(8, _round_up(rows, 8)))
    rows_p = _round_up(max(rows, tile_r), tile_r)
    pad = rows_p * lane - n
    if pad:
        flat = jnp.pad(flat, (0, pad))
    x2d = flat.reshape(rows_p, lane)

    out = pl.pallas_call(
        _normalize_kernel,
        out_shape=jax.ShapeDtypeStruct(x2d.shape, x2d.dtype),
        grid=(rows_p // tile_r,),
        in_specs=[pl.BlockSpec((tile_r, lane), lambda i: (i, 0))],
        out_specs=pl.BlockSpec((tile_r, lane), lambda i: (i, 0)),
        compiler_params=pltpu.CompilerParams(
            dimension_semantics=("parallel",)),
    )(x2d)
    return out.reshape(-1)[:n].reshape(orig_shape)


# ----------------------------------------------------------------------------- #
# Kernel 2: backbone2d stem — 7x7 stride-2 conv + folded BN + ReLU, done as
# 4 row-tap matmuls over a space-to-depth / column-unfolded input (K = 48),
# bf16 operands, f32 accumulation in VMEM scratch, bf16 lane-dense output.
# ----------------------------------------------------------------------------- #
_HALO_ROWS = 8            # fixed small block for the next-band halo (>= 3 needed)


def _stem_kernel(u0_ref, u1_ref, w_ref, b_ref, o_ref, acc_ref):
    tile_h = u0_ref.shape[1]
    wo = u0_ref.shape[2]
    k = u0_ref.shape[3]

    # row-tap a = 0 initializes the accumulator (full tile)
    x0 = u0_ref[0].reshape(tile_h * wo, k)
    acc_ref[...] = jnp.dot(x0, w_ref[0], preferred_element_type=jnp.float32)

    # row-taps a = 1..3: main part from this band, tail rows from the halo band
    for a in range(1, 4):
        w_a = w_ref[a]
        m0 = (tile_h - a) * wo
        xa = u0_ref[0, a:, :, :].reshape(m0, k)
        acc_ref[0:m0, :] += jnp.dot(xa, w_a, preferred_element_type=jnp.float32)
        xh = u1_ref[0, 0:a, :, :].reshape(a * wo, k)
        acc_ref[m0:, :] += jnp.dot(xh, w_a, preferred_element_type=jnp.float32)

    # bias (folded BN beta) + ReLU, single bf16 lane-dense store
    o_ref[0] = jnp.maximum(acc_ref[...] + b_ref[...], 0.0).astype(o_ref.dtype)


def prepare_stem_params(w_oihw, gamma, beta, cpad=128):
    """Fold /255 + BN gamma into the weight and repack it for the 4-row-tap form.

    Returns:
      w3     [4, 48, cpad] bf16 : w3[a, ((b*2+pi)*2+pj)*Cin + c, co]
                                  = w[co, c, 2a+pi, 2b+pj] * gamma[co] / 255
      beta_p [1, cpad]     f32  : folded BN shift (bias)
    """
    w = np.asarray(w_oihw, np.float32)                  # (Cout, Cin, 7, 7)
    g = np.asarray(gamma, np.float32) / 255.0
    cout, cin, kh, kw = w.shape
    w3 = np.zeros((4, 4 * 2 * 2 * cin, cpad), np.float32)
    for a in range(4):
        for pi in range(2):
            di = 2 * a + pi
            if di >= kh:
                continue
            for b in range(4):
                for pj in range(2):
                    dj = 2 * b + pj
                    if dj >= kw:
                        continue
                    for c in range(cin):
                        kk = ((b * 2 + pi) * 2 + pj) * cin + c
                        w3[a, kk, :cout] = w[:, c, di, dj] * g
    beta_p = np.zeros((1, cpad), np.float32)
    beta_p[0, :cout] = np.asarray(beta, np.float32)
    return jnp.asarray(w3, jnp.bfloat16), jnp.asarray(beta_p, jnp.float32)


def _pick_tile_h(ho, wo, *, target_rows=8192, cap=64):
    """Largest multiple-of-8 divisor of Ho, bounded so tile_h*Wo ~ target_rows.

    Big tiles amortize the per-grid-step overhead (one TensorCore per step);
    grid = (N, Ho/tile_h) still gives plenty of 'parallel' steps for v7x.
    """
    want = max(8, min(cap, target_rows // max(wo, 1)))
    best = 8
    d = 8
    while d <= min(want, ho):
        if ho % d == 0:
            best = d
        d += 8
    return min(best, ho)


def _unfold_stem_input(imgs_nchw, tile_h):
    """Pad + space-to-depth + coarse-column unfold -> U[n, hc, ow, 48] bf16.

    U[n, hc, ow, ((b*2+pi)*2+pj)*C + c] = Xpad[n, 2*hc + pi, 2*(ow+b) + pj, c]
    This is the only host-side pass over the image (~4x the image in bytes,
    vs ~12.25x for full im2col plus its extra HBM round trip).
    """
    n, c, h, w = imgs_nchw.shape
    ho, wo = h // 2, w // 2
    hc, wc = ho + 3, wo + 3
    x = jnp.transpose(imgs_nchw, (0, 2, 3, 1)).astype(jnp.bfloat16)   # NHWC bf16
    x = jnp.pad(x, ((0, 0), (3, 3), (3, 3), (0, 0)))                  # [n, H+6, W+6, C]
    s = x.reshape(n, hc, 2, wc, 2, c)                                 # (n, hc, pi, wc, pj, c)
    cols = [s[:, :, :, b:b + wo, :, :] for b in range(4)]             # wc = ow + b
    u = jnp.stack(cols, axis=3)                                       # (n, hc, pi, b, ow, pj, c)
    u = jnp.transpose(u, (0, 1, 4, 3, 2, 5, 6))                       # (n, hc, ow, b, pi, pj, c)
    u = u.reshape(n, hc, wo, 4 * 2 * 2 * c)                           # K = 48
    # pad rows so the "next band" halo BlockSpec is always in range
    r_blocks = ho // tile_h
    rows_target = (r_blocks + 1) * tile_h
    u = jnp.pad(u, ((0, 0), (0, rows_target - hc), (0, 0), (0, 0)))
    return u, ho, wo


@functools.partial(jax.jit, static_argnames=("tile_cap", "target_rows"))
def pallas_backbone_stem(imgs_nchw, w3, beta_p, *, tile_cap=64, target_rows=8192):
    """ResNet-18 stem: (x/255) -> conv 7x7 s2 p3 -> folded BN -> ReLU.

    imgs_nchw: [N, 3, H, W] float32 raw pixels (0..255), H % 16 == 0, W % 16 == 0
    w3/beta_p: from prepare_stem_params
    returns    [N, H//2, W//2, 128] bf16 (NHWC, lane-dense; channels [:64] valid,
               [64:] are exact zeros).
    """
    n, c, h, w = imgs_nchw.shape
    if h % 16 or w % 16:
        # TODO(synk): general H/W via output-column padding; real pipeline is 480x640.
        raise ValueError("pallas_backbone_stem requires H % 16 == 0 and W % 16 == 0")
    ho, wo = h // 2, w // 2
    tile_h = _pick_tile_h(ho, wo, target_rows=target_rows, cap=tile_cap)
    r_blocks = ho // tile_h

    u, ho, wo = _unfold_stem_input(imgs_nchw, tile_h)
    k = u.shape[-1]                    # 48
    cpad = w3.shape[-1]                # 128
    m_tile = tile_h * wo
    halo_blk = tile_h // _HALO_ROWS    # tile_h is a multiple of 8

    flops = 2 * n * ho * wo * (4 * k) * cpad
    bytes_accessed = int(u.size * 2 * (1.0 + _HALO_ROWS / tile_h)
                         + w3.size * 2 + beta_p.size * 4
                         + n * ho * wo * cpad * 2)

    out = pl.pallas_call(
        _stem_kernel,
        out_shape=jax.ShapeDtypeStruct((n, ho * wo, cpad), jnp.bfloat16),
        grid=(n, r_blocks),
        in_specs=[
            # current row band of U (resident weight-stationary style streaming)
            pl.BlockSpec((1, tile_h, wo, k), lambda i, r: (i, r, 0, 0)),
            # small fixed-size next-band view of the SAME array -> 3-row halo
            pl.BlockSpec((1, _HALO_ROWS, wo, k),
                         lambda i, r: (i, (r + 1) * halo_blk, 0, 0)),
            # resident repacked weight [4, 48, 128] (bf16)
            pl.BlockSpec((4, k, cpad), lambda i, r: (0, 0, 0)),
            # resident bias [1, 128] (f32)
            pl.BlockSpec((1, cpad), lambda i, r: (0, 0)),
        ],
        out_specs=pl.BlockSpec((1, m_tile, cpad), lambda i, r: (i, r, 0)),
        scratch_shapes=[pltpu.VMEM((m_tile, cpad), jnp.float32)],
        compiler_params=pltpu.CompilerParams(
            dimension_semantics=("parallel", "parallel")),
        cost_estimate=pl.CostEstimate(flops=flops, transcendentals=0,
                                      bytes_accessed=bytes_accessed),
    )(u, u, w3, beta_p)

    return out.reshape(n, ho, wo, cpad)


# ----------------------------------------------------------------------------- #
# Kernel 3: compute_scale_factor
#   scale = exp(mean(log(a) - log(b), dim=2)).squeeze(1)
# Data reshaped to full (tile_r, 128) vreg tiles per batch row (B on the outer
# axis) with a resident (B, 1) output accumulator and pl.when finalize.
# ----------------------------------------------------------------------------- #
def _scale_factor_kernel(a_ref, b_ref, o_ref, *, inv_n):
    kstep = pl.program_id(0)

    @pl.when(kstep == 0)
    def _():
        o_ref[...] = jnp.zeros_like(o_ref)

    d = jnp.log(a_ref[...]) - jnp.log(b_ref[...])           # (B, tile_r, 128)
    o_ref[...] += jnp.sum(d, axis=(1, 2))[:, None]

    @pl.when(kstep == pl.num_programs(0) - 1)
    def _():
        o_ref[...] = jnp.exp(o_ref[...] * inv_n)


def pallas_compute_scale_factor(disparity_syn, disp, *, max_tile_rows=64):
    """disparity_syn, disp: [B, 1, N] positive float32 -> scale factor [B]."""
    batch, _, n = disparity_syn.shape
    a = disparity_syn.reshape(batch, n).astype(jnp.float32)
    b = disp.reshape(batch, n).astype(jnp.float32)

    rows_needed = pl.cdiv(n, 128)
    tile_r = min(max_tile_rows, max(8, _round_up(rows_needed, 8)))
    rows_p = _round_up(max(rows_needed, tile_r), tile_r)
    np_total = rows_p * 128
    if np_total != n:
        # pad with ones: log(1) - log(1) == 0 contributes nothing to the sum
        a = jnp.pad(a, ((0, 0), (0, np_total - n)), constant_values=1.0)
        b = jnp.pad(b, ((0, 0), (0, np_total - n)), constant_values=1.0)
    a = a.reshape(batch, rows_p, 128)
    b = b.reshape(batch, rows_p, 128)

    kernel = functools.partial(_scale_factor_kernel, inv_n=1.0 / n)
    out = pl.pallas_call(
        kernel,
        out_shape=jax.ShapeDtypeStruct((batch, 1), jnp.float32),
        grid=(rows_p // tile_r,),
        in_specs=[pl.BlockSpec((batch, tile_r, 128), lambda kk: (0, kk, 0)),
                  pl.BlockSpec((batch, tile_r, 128), lambda kk: (0, kk, 0))],
        out_specs=pl.BlockSpec((batch, 1), lambda kk: (0, 0)),   # resident accumulator
        compiler_params=pltpu.CompilerParams(
            dimension_semantics=("arbitrary",)),
    )(a, b)
    return out[:, 0]


# ----------------------------------------------------------------------------- #
# SelfRecon wrapper (forward-pass glue)
# ----------------------------------------------------------------------------- #
class SelfReconPallas:
    def __init__(self, key):
        k_w, k_g, k_b = jax.random.split(key, 3)
        # ResNet-18 stem conv weight [64, 3, 7, 7] (deterministic synthetic init)
        self.stem_w = jax.random.normal(k_w, (64, 3, 7, 7), jnp.float32) * 0.05
        # folded BN scale/shift
        self.stem_gamma = 1.0 + 0.01 * jax.random.normal(k_g, (64,), jnp.float32)
        self.stem_beta = 0.01 * jax.random.normal(k_b, (64,), jnp.float32)
        # /255 + gamma folded into a repacked (4-row-tap, K=48) bf16 weight
        self.stem_w3, self.stem_beta_p = prepare_stem_params(
            self.stem_w, self.stem_gamma, self.stem_beta)
        # pixel mean / std buffers (declared in the reference __init__; not
        # applied in its forward either)
        self.pixel_mean = jnp.array([103.53, 116.28, 123.675], jnp.float32).reshape(-1, 1, 1)
        self.pixel_std = jnp.array([1.0, 1.0, 1.0], jnp.float32).reshape(-1, 1, 1)

    def normalizer(self, x):
        return pallas_normalizer(x)

    def compute_scale_factor(self, disparity_syn_pt3dsrc, pt3d_disp_src):
        return pallas_compute_scale_factor(disparity_syn_pt3dsrc, pt3d_disp_src)

    def forward(self, inputs):
        imgs = inputs["imgs"]                       # [B, V, 3, H, W], NCHW per view
        B, V, C, H, W = imgs.shape

        # `imgs = torch.unbind(inputs['imgs'], 1); features = [backbone2d(img) ...]`
        # All V views batched into a SINGLE pallas_call; /255 + BN gamma fused
        # into the conv weight, so the image is read from HBM exactly once.
        imgs_bv = imgs.reshape(B * V, C, H, W)
        feat_bv = pallas_backbone_stem(imgs_bv, self.stem_w3, self.stem_beta_p)
        Ho, Wo, Cpad = feat_bv.shape[1:]
        feat_bv = feat_bv.reshape(B, V, Ho, Wo, Cpad)
        # features stay NHWC / bf16 / 128-channel padded (channels [:64] valid);
        # downstream consumers slice lazily instead of paying a relayout pass.
        features = [[feat_bv[:, v]] for v in range(V)]

        # TODO(synk): full ResnetEncoder produces 5 feature scales; only the stem
        # stage is implemented here, so the [-3:] / [:-3] split is degenerate.
        features_sdf = [feat[-3:] for feat in features]
        features_nerf = [feat[:-3] for feat in features]

        # TODO(synk): NeuConNet (sparse 3-D conv + GRU fusion), DepthDecoder/NeRF,
        # MPI homography rendering, SSIM and LPIPS have no clean Pallas equivalent.
        outputs = {"features_sdf": features_sdf, "features_nerf": features_nerf}
        rgb_loss = planar_loss = gt_loss = total_loss = None

        zero = jnp.array(0, jnp.int32)
        nerf_loss_dict = {
            "loss": zero, "loss_rgb_src": zero, "loss_ssim_src": zero,
            "loss_depth_src": zero, "loss_smooth_src": zero, "loss_smooth_tgt": zero,
            "loss_smooth_src_v2": zero, "loss_smooth_tgt_v2": zero,
            "loss_rgb_tgt": zero, "loss_ssim_tgt": zero, "lpips_tgt": zero,
            "psnr_tgt": zero, "lpips_src": zero, "psnr_src": zero,
            "loss_depth_tgt": zero,
        }
        return outputs, rgb_loss, planar_loss, gt_loss, total_loss, nerf_loss_dict


# ----------------------------------------------------------------------------- #
# Main
# ----------------------------------------------------------------------------- #
if __name__ == "__main__":
    key = jax.random.PRNGKey(0)
    k_img, k_a, k_b, k_model = jax.random.split(key, 4)

    B, V, C, H, W = 2, 2, 3, 16, 16
    imgs = jax.random.uniform(k_img, (B, V, C, H, W), jnp.float32, 0.0, 255.0)
    inputs = {"imgs": imgs}

    model = SelfReconPallas(k_model)
    outputs, *_rest, nerf_loss_dict = model.forward(inputs)
    feat0 = outputs["features_sdf"][0][0]          # view 0, [B, H/2, W/2, 128] bf16
    jax.block_until_ready(feat0)

    # ---- reference check: stem (fused /255 + conv + folded BN + ReLU) ---- #
    img0 = imgs[:, 0] / 255.0
    ref = lax.conv_general_dilated(
        img0, model.stem_w, window_strides=(2, 2), padding=((3, 3), (3, 3)),
        dimension_numbers=("NCHW", "OIHW", "NCHW"))
    ref = jnp.maximum(ref * model.stem_gamma[None, :, None, None]
                      + model.stem_beta[None, :, None, None], 0.0)
    ref_nhwc = jnp.transpose(ref, (0, 2, 3, 1))
    assert feat0.shape == (B, H // 2, W // 2, 128)
    got = feat0[..., :64].astype(jnp.float32)
    # bf16 operands (f32 accumulation) -> relaxed tolerance vs f32 reference
    assert jnp.allclose(got, ref_nhwc, atol=5e-2, rtol=5e-2)
    # padded channels must be exact zeros
    assert bool(jnp.all(feat0[..., 64:] == 0))

    # ---- reference check: normalizer ---- #
    norm = pallas_normalizer(imgs)
    jax.block_until_ready(norm)
    assert jnp.allclose(norm, imgs / 255.0, atol=1e-6)

    # ---- reference check: compute_scale_factor ---- #
    N = 8
    a = jax.random.uniform(k_a, (B, 1, N), jnp.float32, 0.1, 2.0)
    b = jax.random.uniform(k_b, (B, 1, N), jnp.float32, 0.1, 2.0)
    sf = model.compute_scale_factor(a, b)
    jax.block_until_ready(sf)
    sf_ref = jnp.exp(jnp.mean(jnp.log(a) - jnp.log(b), axis=2))[:, 0]
    assert sf.shape == (B,)
    assert jnp.allclose(sf, sf_ref, atol=1e-5, rtol=1e-5)

    print("KERNEL_OK")
</pallas_src>

<mosaic_0001>
module attributes {stable_mosaic.version = 11 : i64} {
  func.func @_stem_kernel(%arg0: i32, %arg1: i32, %arg2: memref<1x8x8x48xbf16, #tpu.memory_space<vmem>>, %arg3: memref<1x8x8x48xbf16, #tpu.memory_space<vmem>>, %arg4: memref<4x48x128xbf16, #tpu.memory_space<vmem>>, %arg5: memref<1x128xf32, #tpu.memory_space<vmem>>, %arg6: memref<1x64x128xbf16, #tpu.memory_space<vmem>>, %arg7: memref<64x128xf32, #tpu.memory_space<vmem>>) attributes {dimension_semantics = [#tpu.dimension_semantics<parallel>, #tpu.dimension_semantics<parallel>], iteration_bounds = array<i64: 4, 1>, scalar_prefetch = 0 : i64, scratch_operands = 1 : i64, tpu.core_type = #tpu.core_type<tc>, window_params = [{transform_indices = @transform_0, window_bounds = array<i64: 1, 8, 8, 48>}, {transform_indices = @transform_1, window_bounds = array<i64: 1, 8, 8, 48>}, {pipeline_mode = #tpu.pipeline_mode<synchronous>, transform_indices = @transform_2, window_bounds = array<i64: 4, 48, 128>}, {pipeline_mode = #tpu.pipeline_mode<synchronous>, transform_indices = @transform_3, window_bounds = array<i64: 1, 128>}, {transform_indices = @transform_4, window_bounds = array<i64: 1, 64, 128>}]} {
    %c0 = arith.constant 0 : index
    %c0_0 = arith.constant 0 : index
    %c0_1 = arith.constant 0 : index
    %c0_2 = arith.constant 0 : index
    %0 = vector.load %arg2[%c0, %c0_0, %c0_1, %c0_2] : memref<1x8x8x48xbf16, #tpu.memory_space<vmem>>, vector<1x8x8x48xbf16>
    %1 = vector.shape_cast %0 : vector<1x8x8x48xbf16> to vector<8x8x48xbf16>
    %2 = vector.shape_cast %1 : vector<8x8x48xbf16> to vector<64x48xbf16>
    %c0_3 = arith.constant 0 : index
    %c0_4 = arith.constant 0 : index
    %c0_5 = arith.constant 0 : index
    %3 = vector.load %arg4[%c0_3, %c0_4, %c0_5] : memref<4x48x128xbf16, #tpu.memory_space<vmem>>, vector<1x48x128xbf16>
    %4 = vector.shape_cast %3 : vector<1x48x128xbf16> to vector<48x128xbf16>
    %cst = arith.constant dense<0.000000e+00> : vector<64x128xf32>
    %5 = tpu.matmul %2, %4, %cst {dimension_numbers = #tpu.dot_dimension_numbers<[1], [0], [0], [1], [0, 0, 1, 1], [], []>} : vector<64x48xbf16>, vector<48x128xbf16>, vector<64x128xf32> -> vector<64x128xf32>
    %c0_6 = arith.constant 0 : index
    %c0_7 = arith.constant 0 : index
    %6 = vector.load %arg7[%c0_6, %c0_7] : memref<64x128xf32, #tpu.memory_space<vmem>>, vector<64x128xf32>
    tpu.vector_store %arg7[%c0_6, %c0_7], %5 {strides = array<i32>} : memref<64x128xf32, #tpu.memory_space<vmem>>, vector<64x128xf32>,
    %c1 = arith.constant 1 : index
    %c0_8 = arith.constant 0 : index
    %c0_9 = arith.constant 0 : index
    %7 = vector.load %arg4[%c1, %c0_8, %c0_9] : memref<4x48x128xbf16, #tpu.memory_space<vmem>>, vector<1x48x128xbf16>
    %8 = vector.shape_cast %7 : vector<1x48x128xbf16> to vector<48x128xbf16>
    %c0_10 = arith.constant 0 : index
    %c1_11 = arith.constant 1 : index
    %c0_12 = arith.constant 0 : index
    %c0_13 = arith.constant 0 : index
    %9 = vector.load %arg2[%c0_10, %c1_11, %c0_12, %c0_13] : memref<1x8x8x48xbf16, #tpu.memory_space<vmem>>, vector<1x7x8x48xbf16>
    %10 = vector.shape_cast %9 : vector<1x7x8x48xbf16> to vector<7x8x48xbf16>
    %11 = vector.shape_cast %10 : vector<7x8x48xbf16> to vector<56x48xbf16>
    %c0_14 = arith.constant 0 : index
    %c0_15 = arith.constant 0 : index
    %12 = vector.load %arg7[%c0_14, %c0_15] : memref<64x128xf32, #tpu.memory_space<vmem>>, vector<56x128xf32>
    %cst_16 = arith.constant dense<0.000000e+00> : vector<56x128xf32>
    %13 = tpu.matmul %11, %8, %cst_16 {dimension_numbers = #tpu.dot_dimension_numbers<[1], [0], [0], [1], [0, 0, 1, 1], [], []>} : vector<56x48xbf16>, vector<48x128xbf16>, vector<56x128xf32> -> vector<56x128xf32>
    %14 = arith.addf %12, %13 : vector<56x128xf32>
    %c0_17 = arith.constant 0 : index
    %c0_18 = arith.constant 0 : index
    %15 = vector.load %arg7[%c0_17, %c0_18] : memref<64x128xf32, #tpu.memory_space<vmem>>, vector<56x128xf32>
    tpu.vector_store %arg7[%c0_17, %c0_18], %14 {strides = array<i32>} : memref<64x128xf32, #tpu.memory_space<vmem>>, vector<56x128xf32>,
    %c0_19 = arith.constant 0 : index
    %c0_20 = arith.constant 0 : index
    %c0_21 = arith.constant 0 : index
    %c0_22 = arith.constant 0 : index
    %16 = vector.load %arg3[%c0_19, %c0_20, %c0_21, %c0_22] : memref<1x8x8x48xbf16, #tpu.memory_space<vmem>>, vector<1x1x8x48xbf16>
    %17 = vector.shape_cast %16 : vector<1x1x8x48xbf16> to vector<1x8x48xbf16>
    %18 = vector.shape_cast %17 : vector<1x8x48xbf16> to vector<8x48xbf16>
    %c56 = arith.constant 56 : index
    %c0_23 = arith.constant 0 : index
    %19 = vector.load %arg7[%c56, %c0_23] : memref<64x128xf32, #tpu.memory_space<vmem>>, vector<8x128xf32>
    %cst_24 = arith.constant dense<0.000000e+00> : vector<8x128xf32>
    %20 = tpu.matmul %18, %8, %cst_24 {dimension_numbers = #tpu.dot_dimension_numbers<[1], [0], [0], [1], [0, 0, 1, 1], [], []>} : vector<8x48xbf16>, vector<48x128xbf16>, vector<8x128xf32> -> vector<8x128xf32>
    %21 = arith.addf %19, %20 : vector<8x128xf32>
    %c56_25 = arith.constant 56 : index
    %c0_26 = arith.constant 0 : index
    %22 = vector.load %arg7[%c56_25, %c0_26] : memref<64x128xf32, #tpu.memory_space<vmem>>, vector<8x128xf32>
    tpu.vector_store %arg7[%c56_25, %c0_26], %21 {strides = array<i32>} : memref<64x128xf32, #tpu.memory_space<vmem>>, vector<8x128xf32>,
    %c2 = arith.constant 2 : index
    %c0_27 = arith.constant 0 : index
    %c0_28 = arith.constant 0 : index
    %23 = vector.load %arg4[%c2, %c0_27, %c0_28] : memref<4x48x128xbf16, #tpu.memory_space<vmem>>, vector<1x48x128xbf16>
    %24 = vector.shape_cast %23 : vector<1x48x128xbf16> to vector<48x128xbf16>
    %c0_29 = arith.constant 0 : index
    %c2_30 = arith.constant 2 : index
    %c0_31 = arith.constant 0 : index
    %c0_32 = arith.constant 0 : index
    %25 = vector.load %arg2[%c0_29, %c2_30, %c0_31, %c0_32] : memref<1x8x8x48xbf16, #tpu.memory_space<vmem>>, vector<1x6x8x48xbf16>
    %26 = vector.shape_cast %25 : vector<1x6x8x48xbf16> to vector<6x8x48xbf16>
    %27 = vector.shape_cast %26 : vector<6x8x48xbf16> to vector<48x48xbf16>
    %c0_33 = arith.constant 0 : index
    %c0_34 = arith.constant 0 : index
    %28 = vector.load %arg7[%c0_33, %c0_34] : memref<64x128xf32, #tpu.memory_space<vmem>>, vector<48x128xf32>
    %cst_35 = arith.constant dense<0.000000e+00> : vector<48x128xf32>
    %29 = tpu.matmul %27, %24, %cst_35 {dimension_numbers = #tpu.dot_dimension_numbers<[1], [0], [0], [1], [0, 0, 1, 1], [], []>} : vector<48x48xbf16>, vector<48x128xbf16>, vector<48x128xf32> -> vector<48x128xf32>
    %30 = arith.addf %28, %29 : vector<48x128xf32>
    %c0_36 = arith.constant 0 : index
    %c0_37 = arith.constant 0 : index
    %31 = vector.load %arg7[%c0_36, %c0_37] : memref<64x128xf32, #tpu.memory_space<vmem>>, vector<48x128xf32>
    tpu.vector_store %arg7[%c0_36, %c0_37], %30 {strides = array<i32>} : memref<64x128xf32, #tpu.memory_space<vmem>>, vector<48x128xf32>,
    %c0_38 = arith.constant 0 : index
    %c0_39 = arith.constant 0 : index
    %c0_40 = arith.constant 0 : index
    %c0_41 = arith.constant 0 : index
    %32 = vector.load %arg3[%c0_38, %c0_39, %c0_40, %c0_41] : memref<1x8x8x48xbf16, #tpu.memory_space<vmem>>, vector<1x2x8x48xbf16>
    %33 = vector.shape_cast %32 : vector<1x2x8x48xbf16> to vector<2x8x48xbf16>
    %34 = vector.shape_cast %33 : vector<2x8x48xbf16> to vector<16x48xbf16>
    %c48 = arith.constant 48 : index
    %c0_42 = arith.constant 0 : index
    %35 = vector.load %arg7[%c48, %c0_42] : memref<64x128xf32, #tpu.memory_space<vmem>>, vector<16x128xf32>
    %cst_43 = arith.constant dense<0.000000e+00> : vector<16x128xf32>
    %36 = tpu.matmul %34, %24, %cst_43 {dimension_numbers = #tpu.dot_dimension_numbers<[1], [0], [0], [1], [0, 0, 1, 1], [], []>} : vector<16x48xbf16>, vector<48x128xbf16>, vector<16x128xf32> -> vector<16x128xf32>
    %37 = arith.addf %35, %36 : vector<16x128xf32>
    %c48_44 = arith.constant 48 : index
    %c0_45 = arith.constant 0 : index
    %38 = vector.load %arg7[%c48_44, %c0_45] : memref<64x128xf32, #tpu.memory_space<vmem>>, vector<16x128xf32>
    tpu.vector_store %arg7[%c48_44, %c0_45], %37 {strides = array<i32>} : memref<64x128xf32, #tpu.memory_space<vmem>>, vector<16x128xf32>,
    %c3 = arith.constant 3 : index
    %c0_46 = arith.constant 0 : index
    %c0_47 = arith.constant 0 : index
    %39 = vector.load %arg4[%c3, %c0_46, %c0_47] : memref<4x48x128xbf16, #tpu.memory_space<vmem>>, vector<1x48x128xbf16>
    %40 = vector.shape_cast %39 : vector<1x48x128xbf16> to vector<48x128xbf16>
    %c0_48 = arith.constant 0 : index
    %c3_49 = arith.constant 3 : index
    %c0_50 = arith.constant 0 : index
    %c0_51 = arith.constant 0 : index
    %41 = vector.load %arg2[%c0_48, %c3_49, %c0_50, %c0_51] : memref<1x8x8x48xbf16, #tpu.memory_space<vmem>>, vector<1x5x8x48xbf16>
    %42 = vector.shape_cast %41 : vector<1x5x8x48xbf16> to vector<5x8x48xbf16>
    %43 = vector.shape_cast %42 : vector<5x8x48xbf16> to vector<40x48xbf16>
    %c0_52 = arith.constant 0 : index
    %c0_53 = arith.constant 0 : index
    %44 = vector.load %arg7[%c0_52, %c0_53] : memref<64x128xf32, #tpu.memory_space<vmem>>, vector<40x128xf32>
    %cst_54 = arith.constant dense<0.000000e+00> : vector<40x128xf32>
    %45 = tpu.matmul %43, %40, %cst_54 {dimension_numbers = #tpu.dot_dimension_numbers<[1], [0], [0], [1], [0, 0, 1, 1], [], []>} : vector<40x48xbf16>, vector<48x128xbf16>, vector<40x128xf32> -> vector<40x128xf32>
    %46 = arith.addf %44, %45 : vector<40x128xf32>
    %c0_55 = arith.constant 0 : index
    %c0_56 = arith.constant 0 : index
    %47 = vector.load %arg7[%c0_55, %c0_56] : memref<64x128xf32, #tpu.memory_space<vmem>>, vector<40x128xf32>
    tpu.vector_store %arg7[%c0_55, %c0_56], %46 {strides = array<i32>} : memref<64x128xf32, #tpu.memory_space<vmem>>, vector<40x128xf32>,
    %c0_57 = arith.constant 0 : index
    %c0_58 = arith.constant 0 : index
    %c0_59 = arith.constant 0 : index
    %c0_60 = arith.constant 0 : index
    %48 = vector.load %arg3[%c0_57, %c0_58, %c0_59, %c0_60] : memref<1x8x8x48xbf16, #tpu.memory_space<vmem>>, vector<1x3x8x48xbf16>
    %49 = vector.shape_cast %48 : vector<1x3x8x48xbf16> to vector<3x8x48xbf16>
    %50 = vector.shape_cast %49 : vector<3x8x48xbf16> to vector<24x48xbf16>
    %c40 = arith.constant 40 : index
    %c0_61 = arith.constant 0 : index
    %51 = vector.load %arg7[%c40, %c0_61] : memref<64x128xf32, #tpu.memory_space<vmem>>, vector<24x128xf32>
    %cst_62 = arith.constant dense<0.000000e+00> : vector<24x128xf32>
    %52 = tpu.matmul %50, %40, %cst_62 {dimension_numbers = #tpu.dot_dimension_numbers<[1], [0], [0], [1], [0, 0, 1, 1], [], []>} : vector<24x48xbf16>, vector<48x128xbf16>, vector<24x128xf32> -> vector<24x128xf32>
    %53 = arith.addf %51, %52 : vector<24x128xf32>
    %c40_63 = arith.constant 40 : index
    %c0_64 = arith.constant 0 : index
    %54 = vector.load %arg7[%c40_63, %c0_64] : memref<64x128xf32, #tpu.memory_space<vmem>>, vector<24x128xf32>
    tpu.vector_store %arg7[%c40_63, %c0_64], %53 {strides = array<i32>} : memref<64x128xf32, #tpu.memory_space<vmem>>, vector<24x128xf32>,
    %c0_65 = arith.constant 0 : index
    %c0_66 = arith.constant 0 : index
    %55 = vector.load %arg7[%c0_65, %c0_66] : memref<64x128xf32, #tpu.memory_space<vmem>>, vector<64x128xf32>
    %c0_67 = arith.constant 0 : index
    %c0_68 = arith.constant 0 : index
    %56 = vector.load %arg5[%c0_67, %c0_68] : memref<1x128xf32, #tpu.memory_space<vmem>>, vector<1x128xf32>
    %57 = vector.broadcast %56 : vector<1x128xf32> to vector<64x128xf32>
    %58 = arith.addf %55, %57 : vector<64x128xf32>
    %cst_69 = arith.constant 0.000000e+00 : f32
    %59 = vector.broadcast %cst_69 : f32 to vector<64x128xf32>
    %60 = arith.maximumf %58, %59 : vector<64x128xf32>
    %61 = arith.truncf %60 : vector<64x128xf32> to vector<64x128xbf16>
    %c0_70 = arith.constant 0 : index
    %c0_71 = arith.constant 0 : index
    %c0_72 = arith.constant 0 : index
    %62 = vector.load %arg6[%c0_70, %c0_71, %c0_72] : memref<1x64x128xbf16, #tpu.memory_space<vmem>>, vector<1x64x128xbf16>
    %63 = vector.shape_cast %62 : vector<1x64x128xbf16> to vector<64x128xbf16>
    %64 = vector.shape_cast %61 : vector<64x128xbf16> to vector<1x64x128xbf16>
    tpu.vector_store %arg6[%c0_70, %c0_71, %c0_72], %64 {strides = array<i32>} : memref<1x64x128xbf16, #tpu.memory_space<vmem>>, vector<1x64x128xbf16>,
    return
  }
  func.func @transform_0(%arg0: i32, %arg1: i32) -> (i32, i32, i32, i32) {
    %c0_i32 = arith.constant 0 : i32
    %c0_i32_0 = arith.constant 0 : i32
    %c0_i32_1 = arith.constant 0 : i32
    return %arg0, %arg1, %c0_i32, %c0_i32_0 : i32, i32, i32, i32
  }
  func.func @transform_1(%arg0: i32, %arg1: i32) -> (i32, i32, i32, i32) {
    %c1_i32 = arith.constant 1 : i32
    %0 = arith.addi %arg1, %c1_i32 : i32
    %c1_i32_0 = arith.constant 1 : i32
    %1 = arith.muli %0, %c1_i32_0 : i32
    %c0_i32 = arith.constant 0 : i32
    %c0_i32_1 = arith.constant 0 : i32
    %c0_i32_2 = arith.constant 0 : i32
    return %arg0, %1, %c0_i32, %c0_i32_1 : i32, i32, i32, i32
  }
  func.func @transform_2(%arg0: i32, %arg1: i32) -> (i32, i32, i32) {
    %c0_i32 = arith.constant 0 : i32
    %c0_i32_0 = arith.constant 0 : i32
    %c0_i32_1 = arith.constant 0 : i32
    %c0_i32_2 = arith.constant 0 : i32
    return %c0_i32, %c0_i32_0, %c0_i32_1 : i32, i32, i32
  }
  func.func @transform_3(%arg0: i32, %arg1: i32) -> (i32, i32) {
    %c0_i32 = arith.constant 0 : i32
    %c0_i32_0 = arith.constant 0 : i32
    %c0_i32_1 = arith.constant 0 : i32
    return %c0_i32, %c0_i32_0 : i32, i32
  }
  func.func @transform_4(%arg0: i32, %arg1: i32) -> (i32, i32, i32) {
    %c0_i32 = arith.constant 0 : i32
    %c0_i32_0 = arith.constant 0 : i32
    return %arg0, %arg1, %c0_i32 : i32, i32, i32
  }
}

</mosaic_0001>

<bundles_post_ra>
// kernel: pallas_backbone_stem.1
= control target key start
LH: loop header
LB: loop body
LE: loop exit
PB: predicated region body
PF: predicated region fallthrough
CT: control target
= control target key end

     0   :  { %9 = vsyncpa [#allocation4], 0  ;;  %s1509_s0 = inlined_call_operand.vmem [shape: bf16[4,16,8,48], index: 0, kind: input, shape index: {}, may-alias: {0,1}]   ;;  %s1510_s1 = inlined_call_operand.vmem [shape: bf16[4,16,8,48], index: 1, kind: input, shape index: {}, may-alias: {0,1}]   ;;  %s1511_s2 = inlined_call_operand.vmem [shape: bf16[4,48,128], index: 2, kind: input, shape index: {}]   ;;  %s1512_s3 = inlined_call_operand.vmem [shape: f32[1,128], index: 3, kind: input, shape index: {}]   ;;  %s1513_s4 = inlined_call_operand.hbm [shape: bf16[4,64,128], index: 4, kind: output, shape index: {}]  }
   0x1   :  { %11 = vsyncpa [#allocation4 + $0x1], 0  ;;  %s1319_s15 = smov 0   ;;  %s1321_s16 = smov 0  }
   0x2   :  { %s1323_s17 = smov 0   ;;  %s1325_s18 = smov 0  }
   0x3   :  { %s1327_s19 = smov 0   ;;  %s1329_s20 = smov 0  }
   0x4 LB: > { %s927_s21 = sadd.s32 4294967295, %s1290_s20   ;;  %s928_s22 = sadd.s32 4294967294, %s1290_s20   ;;  %s1290_s20 = sphi %s1329_s20, %s17_s20   ;;  %s1286_s19 = sphi %s1327_s19, %s1520_s19   ;;  %s1282_s18 = sphi %s1325_s18, %s1519_s18   ;;  %s1278_s17 = sphi %s1323_s17, %s1518_s17   ;;  %s1274_s16 = sphi %s1321_s16, %s1517_s16   ;;  %s1270_s15 = sphi %s1319_s15, %s1516_s15  }
   0x5   : > { %s29_s23 = sadd.s32 1, %s1286_s19  ;;  %s138_s24 = sadd.s32 1, %s1278_s17 }
   0x6   : > { %p31_p0 = scmp.ge.s32.totalorder %s29_s23, 4  ;;  %p148_p1 = scmp.ne.s32.totalorder %s1278_s17, %s1274_s16 }
   0x7   : > { %p149_p2 = scmp.eq.s32.totalorder %s927_s21, 3  ;;  %p154_p3 = scmp.ne.s32.totalorder %s1274_s16, %s1270_s15 }
   0x8   : > { %s1522_s23 = smov (%p31_p0, %s29_s23), 0  ;;  %p155_p5 = scmp.eq.s32.totalorder %s928_s22, 3 }
   0x9   : > { %p1359_p4 = por %p149_p2, %p148_p1  ;;  %s133_s26 = ssub.s32 %s1286_s19, %s1522_s23 }
   0xa   : > { %p931_p6 = scmp.ge.s32.totalorder %s1290_s20, 1  ;;  %p136_p7 = scmp.eq.s32.totalorder %s133_s26, 0 }
   0xb   : > { %p1366_p8 = por %p155_p5, %p154_p3  ;;  %p207_p9 = scmp.lt.s32.totalorder %s1290_s20, 5 }
   0xc   : > { %s1372_s28 = scalar_select %p136_p7, %s1278_s17, %s138_s24  }
   0xd   : > { %p208_p10 = pnand %p931_p6, %p207_p9 }
   0xe   : > { %p248_p11 = scmp.lt.s32.totalorder (!%p208_p10), %s1282_s18, 3  ;;  %s244_s6 = sand.u32 (!%p208_p10), 1, %s1274_s16  }
   0xf   : > { %211 = sbr.rel (%p208_p10) target bundleno = 242 (0xf2), region = 36  ;;  %s932_s7 = sshll.u32 (!%p208_p10), %s244_s6, 5 }
  0x10   : > { %s1129_s9 = sshll.u32 (!%p208_p10), %s1282_s18, 5  ;;  %s813_s14 = scalar_lea.sflag (!%p208_p10), [#allocation4], %s244_s6 }
  0x11   : > { %s826_s12 = scalar_lea.hbm (!%p208_p10), %s1513_s4, %s1129_s9  ;;  %s1232_s29 = scalar_lea.hbm (!%p208_p10), %s1513_s4, 128 }
  0x14   : > { %v1109_v0 = vld [vmem:[%s1511_s2 + $0x10] sm:$0xff]  ;;  %v1112_v1 = vld [vmem:[%s1511_s2 + $0x28] sm:$0xff]  ;;  %v1118_v2 = vld [vmem:[%s1511_s2 + $0x40] sm:$0xff]  ;;  %s249_s13 = scalar_select %p248_p11, %s1282_s18, 3  ;;  %vm323_vm0 = vcmask 392192  }
  0x15   : > { %341 = vmatpush.bf16.msra.mxu0 %v1109_v0  ;;  %448 = vmatpush.bf16.msra.mxu1 %v1112_v1  ;;  %v1108_v3 = vld [vmem:[%s1511_s2 + $0x8] sm:$0xff]  ;;  %v1111_v4 = vld [vmem:[%s1511_s2 + $0x20] sm:$0xff]  ;;  %v1117_v5 = vld [vmem:[%s1511_s2 + $0x38] sm:$0xff] }
  0x16   : > { %495 = vmatpush.bf16.msra.mxu2 %v1112_v1  ;;  %572 = vmatpush.bf16.msra.mxu3 %v1118_v2  ;;  %s1100_s22 = sshll.u32 %s249_s13, 6  ;;  %v1107_v6 = vld [vmem:[%s1511_s2] sm:$0xff]  ;;  %v1110_v7 = vld [vmem:[%s1511_s2 + $0x18] sm:$0xff]  ;;  %v1116_v8 = vld [vmem:[%s1511_s2 + $0x30] sm:$0xff] }
  0x17   : > { %s1102_s24 = sadd.s32 32, %s1100_s22  ;;  %s1403_s8 = scalar_lea.vmem %s1509_s0, %s1100_s22  ;;  %v1125_v12 = vld [vmem:[%s1511_s2 + $0x58] sm:$0xff]  ;;  %v1124_v14 = vld [vmem:[%s1511_s2 + $0x50] sm:$0xff]  ;;  %v1123_v15 = vld [vmem:[%s1511_s2 + $0x48] sm:$0xff] }
  0x18   : > { %s1411_s13 = scalar_lea.vmem %s1510_s1, %s1102_s24  ;;  %v1103_v9 = vld [vmem:[%s1403_s8] sm:$0xff]  ;;  %v1119_v11 = vld [vmem:[%s1403_s8 + $0x8] sm:$0xff]  ;;  %v1120_v18 = vld [vmem:[%s1403_s8 + $0x10] sm:$0xff] }
  0x19   : > { %342 = vmatpush.bf16.msra.mxu0 %v1108_v3  ;;  %449 = vmatpush.bf16.msra.mxu1 %v1111_v4  ;;  %v1113_v10 = vld [vmem:[%s1403_s8 + $0x4] sm:$0xff]  ;;  %v485_v13 = vld [vmem:[%s1411_s13] sm:$0xf]  ;;  %v1114_v17 = vld [vmem:[%s1403_s8 + $0xc] sm:$0xff] }
  0x1a   : > { %496 = vmatpush.bf16.msra.mxu2 %v1111_v4  ;;  %573 = vmatpush.bf16.msra.mxu3 %v1117_v5  ;;  %v1104_v16 = vld [vmem:[%s1403_s8 + $0x8] sm:$0xff]  ;;  %v1122_v19 = vld [vmem:[%s1411_s13] sm:$0xff]  ;;  %v1105_v20 = vld [vmem:[%s1403_s8 + $0x10] sm:$0xff] }
  0x1b   : > { %v1115_v21 = vld [vmem:[%s1403_s8 + $0x14] sm:$0xff]  ;;  %v1126_v23 = vld [vmem:[%s1403_s8 + $0xc] sm:$0xff]  ;;  %v981_v24 = vld [vmem:[%s1403_s8 + $0x1c] sm:$0xf] }
  0x1c   : > { %v1121_v22 = vld [vmem:[%s1403_s8 + $0x18] sm:$0xff]  ;;  %v408_v25 = vunpack.c.l.b16 %v981_v24  ;;  %v1128_v29 = vld [vmem:[%s1411_s13] sm:$0xff]  ;;  %v726_v31 = vld [vmem:[%s1411_s13 + $0x8] sm:$0xf]  ;;  %s829_s13 = sshll.u32 %s826_s12, 4  ;;  %s830_s13 = int_to_ptr.hbm [resolvable:$true] %s829_s13 }
  0x1d   : > { %343 = vmatpush.bf16.msra.mxu0 %v1107_v6  ;;  %450 = vmatpush.bf16.msra.mxu1 %v1110_v7  ;;  %v1106_v26 = vld [vmem:[%s1403_s8 + $0x18] sm:$0xff]  ;;  %v735_v33 = vunpack.c.l.b16 %v726_v31  ;;  %v1211_v62 = vld [vmem:[%s1512_s3] ss:$0 sm:$0xff]  ;;  %s1226_s21 = sshra.s32 %s830_s13, 4  ;;  %s1227_s21 = int_to_ptr.hbm [resolvable:$true] %s1226_s21 }
  0x1e   : > { %497 = vmatpush.bf16.msra.mxu2 %v1110_v7  ;;  %574 = vmatpush.bf16.msra.mxu3 %v1116_v8  ;;  %v412_v27 = vpack.c.b16 %v408_v25, %v408_v25  ;;  %v1127_v28 = vld [vmem:[%s1403_s8 + $0x14] sm:$0xff]  ;;  %v1065_v30 = vld [vmem:[%s1403_s8 + $0x1c] sm:$0xf]  ;;  %s1464_s8 = scalar_lea.vmem [#allocation3], %s932_s7  ;;  %s1228_s22 = scalar_lea.hbm %s1227_s21, 32 }
  0x1f   : > { %v660_v32 = vunpack.c.l.b16 %v1065_v30  ;;  %v737_v35 = vpack.c.b16 %v735_v33, %v735_v33  ;;  %s827_s18 = sshll.u32 %s1464_s8, 4  ;;  %p1229_p12 = scmp.ne.s32.totalorder %s1227_s21, %s1228_s22  ;;  %s828_s18 = int_to_ptr.vmem [resolvable:$true] %s827_s18 }
  0x20   : > { %965 = vmatmul.msk.bf16.vlgmr.msra.gmra.mxu0 %vm323_vm0, %v1103_v9  ;;  %1006 = vmatmul.msk.bf16.vlgmr.msra.gmra.mxu1 %vm323_vm0, %v1113_v10  ;;  %p1233_p1 = scmp.lt.s32.totalorder %s1227_s21, %s1513_s4  ;;  %p1234_p2 = scmp.lt.s32.totalorder %s1232_s29, %s1228_s22 }
  0x21   : > { %1010 = vmatmul.msk.bf16.vlgmr.msra.gmra.mxu2 %vm323_vm0, %v485_v13  ;;  %1047 = vmatmul.msk.bf16.vlgmr.msra.gmra.mxu3 %vm323_vm0, %v1119_v11  ;;  %v663_v34 = vpack.c.b16 %v660_v32, %v660_v32  ;;  %p1230_p13 = pnand %p1229_p12, %p1359_p4 }
  0x22   : > { %620 = vmatpush.bf16.msrb.mxu2 %v1118_v2  ;;  %749 = vmatpush.bf16.msrb.mxu3 %v1125_v12  ;;  %p1235_p3 = por %p1234_p2, %p1233_p1 }
  0x23   : > { %p1231_p0 = pneg %p1230_p13 }
  0x25   : > { %p1236_p5 = pnand %p1235_p3, %p1231_p0 }
  0x26   : > { %621 = vmatpush.bf16.msrb.mxu2 %v1117_v5  ;;  %750 = vmatpush.bf16.msrb.mxu3 %v1124_v14 }
  0x2a   : > { %622 = vmatpush.bf16.msrb.mxu2 %v1116_v8  ;;  %751 = vmatpush.bf16.msrb.mxu3 %v1123_v15 }
  0x2e   : > { %696 = vmatpush.bf16.msra.mxu2 %v1125_v12 }
  0x30   : > { %966 = vmatmul.msk.bf16.gmra.mxu0 %vm323_vm0, %v1104_v16  ;;  %1007 = vmatmul.msk.bf16.gmra.mxu1 %vm323_vm0, %v1114_v17 }
  0x31   : > { %1048 = vmatmul.msk.bf16.gmra.mxu3 %vm323_vm0, %v1120_v18  ;;  %1054 = vmatmul.msk.bf16.vlgmr.msrb.gmra.mxu2 %vm323_vm0, %v1122_v19 }
  0x32   : > { %697 = vmatpush.bf16.msra.mxu2 %v1124_v14 }
  0x36   : > { %698 = vmatpush.bf16.msra.mxu2 %v1123_v15 }
  0x40   : > { %967 = vmatmul.msk.bf16.gmra.mxu0 %vm323_vm0, %v1105_v20  ;;  %1008 = vmatmul.msk.bf16.gmra.mxu1 %vm323_vm0, %v1115_v21 }
  0x41   : > { %1049 = vmatmul.msk.bf16.gmra.mxu3 %vm323_vm0, %v1121_v22  ;;  %1086 = vmatmul.msk.bf16.vlgmr.msra.gmra.mxu2 %vm323_vm0, %v1126_v23 }
  0x50   : > { %968 = vmatmul.msk.bf16.gmra.mxu0 %vm323_vm0, %v1106_v26  ;;  %1009 = vmatmul.msk.bf16.gmra.mxu1 %vm323_vm0, %v412_v27 }
  0x51   : > { %1087 = vmatmul.msk.bf16.gmra.mxu2 %vm323_vm0, %v1127_v28  ;;  %1093 = vmatmul.msk.bf16.vlgmr.msrb.gmra.mxu3 %vm323_vm0, %v1128_v29 }
  0x61   : > { %1088 = vmatmul.msk.bf16.gmra.mxu2 %vm323_vm0, %v663_v34  ;;  %1094 = vmatmul.msk.bf16.gmra.mxu3 %vm323_vm0, %v737_v35 }
  0x9d   : > { %v345_v36 = vpop.f32.mrf.mxu0  ;;  %v452_v37 = vpop.f32.mrf.mxu1 }
  0x9e   : > { %v471_v54 = vadd.f32 %v452_v37, %v345_v36 }
  0xa4   : > { %v499_v38 = vpop.f32.mrf.mxu2  ;;  %v576_v39 = vpop.f32.mrf.mxu3 }
  0xa5   : > { %v347_v40 = vpop.f32.mrf.mxu0  ;;  %v454_v41 = vpop.f32.mrf.mxu1  ;;  %v591_v58 = vadd.f32 %v576_v39, %v471_v54 }
  0xa6   : > { %v472_v60 = vadd.f32 %v454_v41, %v347_v40 }
  0xac   : > { %v501_v42 = vpop.f32.mrf.mxu2  ;;  %v578_v43 = vpop.f32.mrf.mxu3 }
  0xad   : > { %v350_v44 = vpop.f32.mrf.mxu0  ;;  %v457_v45 = vpop.f32.mrf.mxu1  ;;  %v592_v63 = vadd.f32 %v578_v43, %v472_v60 }
  0xae   : > { %v473_v9 = vadd.f32 %v457_v45, %v350_v44 }
  0xb4   : > { %v581_v46 = vpop.f32.mrf.mxu3  ;;  %v624_v47 = vpop.f32.mrf.mxu2 }
  0xb5   : > { %v352_v48 = vpop.f32.mrf.mxu0  ;;  %v459_v49 = vpop.f32.mrf.mxu1  ;;  %v593_v14 = vadd.f32 %v581_v46, %v473_v9 }
  0xb6   : > { %v474_v15 = vadd.f32 %v459_v49, %v352_v48 }
  0xbc   : > { %v583_v50 = vpop.f32.mrf.mxu3  ;;  %v626_v51 = vpop.f32.mrf.mxu2 }
  0xbd   : > { %v355_v52 = vpop.f32.mrf.mxu0  ;;  %v462_v53 = vpop.f32.mrf.mxu1  ;;  %v594_v17 = vadd.f32 %v583_v50, %v474_v15 }
  0xbe   : > { %v475_v25 = vadd.f32 %v462_v53, %v355_v52 }
  0xc4   : > { %v586_v55 = vpop.f32.mrf.mxu3  ;;  %v700_v56 = vpop.f32.mrf.mxu2 }
  0xc5   : > { %v464_v57 = vpop.f32.mrf.mxu1  ;;  %v357_v59 = vpop.f32.mrf.mxu0  ;;  %v714_v61 = vadd.f32 %v700_v56, %v591_v58  ;;  %v595_v34 = vadd.f32 %v586_v55, %v475_v25 }
  0xc6   : > { %v476_v22 = vadd.f32 %v464_v57, %v357_v59 }
  0xc7   : > { %v780_v2 = vadd.f32 %v1211_v62, %v714_v61 }
  0xc9   : > { %v788_v6 = vmax.f32 %v780_v2, 0.0 }
  0xcc   : > { %v588_v0 = vpop.f32.mrf.mxu3  ;;  %v702_v1 = vpop.f32.mrf.mxu2 }
  0xcd   : > { %v715_v3 = vadd.f32 %v702_v1, %v592_v63  ;;  %v467_v4 = vpop.f32.mrf.mxu1  ;;  %v360_v8 = vpop.f32.mrf.mxu0  ;;  %v596_v26 = vadd.f32 %v588_v0, %v476_v22 }
  0xce   : > { %v477_v18 = vadd.f32 %v467_v4, %v360_v8 }
  0xcf   : > { %v781_v5 = vadd.f32 %v1211_v62, %v715_v3 }
  0xd0   : > { %v629_v29 = vadd.f32 %v624_v47, %v477_v18 }
  0xd1   : > { %v789_v7 = vmax.f32 %v781_v5, 0.0 }
  0xd3   : > { %v1133_v10 = vpack.c.bf16 %v789_v7, %v788_v6 }
  0xd4   : > { %v705_v11 = vpop.f32.mrf.mxu2  ;;  %v753_v12 = vpop.f32.mrf.mxu3 }
  0xd5   : > { %1134 = vst [vmem:[%s1464_s8] sm:$0xff] %v1133_v10   ;;  %v469_v13 = vpop.f32.mrf.mxu1  ;;  %v716_v16 = vadd.f32 %v705_v11, %v593_v14  ;;  %v362_v19 = vpop.f32.mrf.mxu0  ;;  %v762_v31 = vadd.f32 %v753_v12, %v596_v26 }
  0xd6   : > { %v503_v27 = vadd.f32 %v499_v38, %v362_v19 }
  0xd7   : > { %v782_v23 = vadd.f32 %v1211_v62, %v716_v16  ;;  %v785_v40 = vadd.f32 %v1211_v62, %v762_v31 }
  0xd8   : > { %v630_v36 = vadd.f32 %v626_v51, %v503_v27 }
  0xd9   : > { %v790_v30 = vmax.f32 %v782_v23, 0.0  ;;  %v793_v45 = vmax.f32 %v785_v40, 0.0 }
  0xdc   : > { %v707_v20 = vpop.f32.mrf.mxu2  ;;  %v755_v21 = vpop.f32.mrf.mxu3 }
  0xdd   : > { %v717_v24 = vadd.f32 %v707_v20, %v594_v17  ;;  %v763_v33 = vadd.f32 %v755_v21, %v629_v29 }
  0xdf   : > { %v783_v28 = vadd.f32 %v1211_v62, %v717_v24  ;;  %v786_v41 = vadd.f32 %v1211_v62, %v763_v33 }
  0xe1   : > { %v791_v32 = vmax.f32 %v783_v28, 0.0  ;;  %v794_v46 = vmax.f32 %v786_v41, 0.0 }
  0xe3   : > { %v1138_v35 = vpack.c.bf16 %v791_v32, %v790_v30 }
  0xe4   : > { %v710_v37 = vpop.f32.mrf.mxu2  ;;  %v758_v39 = vpop.f32.mrf.mxu3 }
  0xe5   : > { %1151 = vst [vmem:[%s1464_s8 + $0x8] sm:$0xff] %v1138_v35   ;;  %v718_v42 = vadd.f32 %v710_v37, %v595_v34  ;;  %v764_v43 = vadd.f32 %v758_v39, %v630_v36 }
  0xe7   : > { %v784_v38 = vadd.f32 %v1211_v62, %v718_v42  ;;  %v787_v44 = vadd.f32 %v1211_v62, %v764_v43 }
  0xe9   : > { %v792_v47 = vmax.f32 %v784_v38, 0.0  ;;  %v795_v48 = vmax.f32 %v787_v44, 0.0 }
  0xeb   : > { %v1143_v49 = vpack.c.bf16 %v793_v45, %v792_v47  ;;  %v1148_v50 = vpack.c.bf16 %v795_v48, %v794_v46 }
  0xec   : > { %v712_v51 = vpop.f32.mrf.mxu2  ;;  %v760_v52 = vpop.f32.mrf.mxu3 }
  0xed   : > { %1152 = vst [vmem:[%s1464_s8 + $0x10] sm:$0xff] %v1143_v49  }
  0xee   : > { %1153 = vst [vmem:[%s1464_s8 + $0x18] sm:$0xff] %v1148_v50  }
  0xef   : > { %1239 = shalt.err (!%p1236_p5)
}
  0xf0   : > { %s1292_s6 = smov 64   ;;  %s1293_s7 = smov 4  }
  0xf1   : > { %1154 = dma.vmem_to_hbm [thread:$0]  (%p1359_p4), %s828_s18, 512, %s830_s13, %s813_s14, %s1292_s6, %s1292_s6, %s1293_s7  }
  0xf2 PF: > { %p1160_p6 = scmp.ge.s32.totalorder %s1290_s20, 2  ;;  %s844_s8 = sand.u32 1, %s1270_s15  }
  0xf3   : > { %s845_s9 = scalar_lea.sflag [#allocation4], %s844_s8 }
  0xf4   : > { %p1157_p7 = pnand %p1160_p6, %p1366_p8 }
  0xf6   : > { %p1158_p9 = pneg %p1157_p7 }
  0xf8   : > { %1265 = dma.done.wait (%p1158_p9), %s845_s9, 512  }
  0xf9   : > { %1267 = vsyncadd (%p1158_p9), %s845_s9, 4294966784  ;;  %s17_s20 = sadd.s32 1, %s1290_s20   ;;  %s1516_s15 = smov %s1274_s16 }
  0xfa   : > { %p14_p10 = scmp.ge.s32.totalorder %s17_s20, 6   ;;  %s1517_s16 = smov %s1278_s17 }
  0xfb   : > { %s1518_s17 = smov %s1372_s28  ;;  %s1519_s18 = smov %s1286_s19 }
  0xfc   : > { %s1520_s19 = smov %s1522_s23  ;;  %16 = sbr.rel (!%p14_p10) target bundleno = 4 (0x4), region = 80 }
 0x101   :  { %851 = vsyncpa [#allocation4], 1 }
 0x102   :  { %853 = vsyncpa [#allocation4 + $0x1], 1 }

</bundles_post_ra>
